<compile_context>
chip_gen: v6e
topology: v6e:2x2x1
jax: 0.10.0
libtpu: 0.0.40
codegen_flags: <defaults>
</compile_context>

<pallas_src>
import functools

import jax
import jax.numpy as jnp
from jax.experimental import pallas as pl
from jax.experimental.pallas import tpu as pltpu


# ----------------------------------------------------------------------------
# Fused kernel: conv (tap-wise big matmul) + ReLU + max-pool + concat + fc.
# ----------------------------------------------------------------------------
def _cnn_kernel(emb_ref, w_all_ref, *refs, filters, filter_num, sent_len):
    n = len(filters)
    conv_b_refs = refs[0:n]          # each (1, FN_i) f32
    w_fc_ref = refs[n]               # (sum(FN), CLASS) f32
    b_fc_ref = refs[n + 1]           # (1, CLASS) f32
    out_ref = refs[n + 2]            # (Bb, CLASS)

    emb = emb_ref[...]                               # (Bb, T, C_in*D) f32
    Bb, T, CD = emb.shape

    # Single projection matmul over ALL filter sizes and taps:
    #   (Bb*T, CD) @ (CD, sum_i F_i*FN_i), bf16 operands, f32 accumulation.
    y = jnp.dot(emb.reshape(Bb * T, CD).astype(w_all_ref.dtype),
                w_all_ref[...],
                preferred_element_type=jnp.float32)
    y = y.reshape(Bb, T, -1)                         # (Bb, T, total_cols) f32

    col = 0
    pooled = []
    for i, (F, FN) in enumerate(zip(filters, filter_num)):
        P = sent_len - F + 1                         # conv output length
        acc = None
        for j in range(F):                           # shifted tap-sum == Conv1d(stride=D)
            tap = y[:, j:j + P, col:col + FN]        # (Bb, P, FN)
            acc = tap if acc is None else acc + tap
            col += FN
        acc = acc + conv_b_refs[i][...]              # bias broadcast
        acc = jnp.maximum(acc, 0.0)                  # ReLU
        pooled.append(jnp.max(acc, axis=1))          # global max-pool -> (Bb, FN)

    feat = jnp.concatenate(pooled, axis=-1)          # (Bb, sum(FN))
    # TODO(synk): F.dropout is identity in eval mode (training=False); the
    # stochastic training-mode dropout is not implemented.
    logits = jnp.dot(feat, w_fc_ref[...],
                     preferred_element_type=jnp.float32) + b_fc_ref[...]
    out_ref[...] = logits.astype(out_ref.dtype)


def cnn_conv_head(emb_cat, w_all, conv_biases, w_fc, b_fc, *,
                  filters, filter_num):
    """emb_cat: (B, T, C_in*D) f32. Returns logits (B, CLASS)."""
    B, T, CD = emb_cat.shape
    C = w_fc.shape[1]
    n = len(filters)

    in_specs = [
        pl.BlockSpec((B, T, CD), lambda b: (b, 0, 0)),       # embeddings (whole batch block)
        pl.BlockSpec(w_all.shape, lambda b: (0, 0)),          # fused conv weights
    ]
    args = [emb_cat, w_all]
    for i in range(n):
        in_specs.append(pl.BlockSpec((1, filter_num[i]), lambda b: (0, 0)))
        args.append(conv_biases[i])
    in_specs += [
        pl.BlockSpec(w_fc.shape, lambda b: (0, 0)),
        pl.BlockSpec((1, C), lambda b: (0, 0)),
    ]
    args += [w_fc, b_fc]

    kernel = functools.partial(_cnn_kernel, filters=tuple(filters),
                               filter_num=tuple(filter_num), sent_len=T)
    return pl.pallas_call(
        kernel,
        out_shape=jax.ShapeDtypeStruct((B, C), jnp.float32),
        grid_spec=pltpu.PrefetchScalarGridSpec(
            num_scalar_prefetch=0,
            grid=(1,),                                  # batch fits one block; tile B (mult. of 8) for big runs
            in_specs=in_specs,
            out_specs=pl.BlockSpec((B, C), lambda b: (b, 0)),
        ),
        compiler_params=pltpu.CompilerParams(
            dimension_semantics=("parallel",)),         # batch blocks are independent
    )(*args)


# ----------------------------------------------------------------------------
# Parameters (deterministic, synthetic) and end-to-end forward.
# ----------------------------------------------------------------------------
def init_params(key, *, vocab_size, word_dim, class_size, filters, filter_num,
                in_channel):
    keys = iter(jax.random.split(key, 32))
    V, D = vocab_size + 2, word_dim

    # nn.Embedding: N(0,1) init, padding row (vocab_size+1) zeroed.
    emb1 = jax.random.normal(next(keys), (V, D), jnp.float32)
    emb1 = emb1.at[vocab_size + 1].set(0.0)
    emb2 = jax.random.normal(next(keys), (V, D), jnp.float32)   # multichannel table
    emb2 = emb2.at[vocab_size + 1].set(0.0)

    conv_taps, conv_b = [], []
    for F, FN in zip(filters, filter_num):
        K = D * F
        bound = 1.0 / ((in_channel * K) ** 0.5)
        w = jax.random.uniform(next(keys), (FN, in_channel, K), jnp.float32,
                               -bound, bound)                    # PyTorch Conv1d layout
        b = jax.random.uniform(next(keys), (1, FN), jnp.float32, -bound, bound)
        # Re-layout (o, c, j*D+d) -> per-tap (j, c*D+d, o) so the conv becomes
        # one matmul against the per-token [channel-major] embedding vector.
        wr = (w.reshape(FN, in_channel, F, D)
               .transpose(2, 1, 3, 0)
               .reshape(F, in_channel * D, FN))
        conv_taps.extend(wr[j] for j in range(F))
        conv_b.append(b)
    # All filter sizes + taps fused along the output dim; bf16 MXU operands.
    w_all = jnp.concatenate(conv_taps, axis=1).astype(jnp.bfloat16)

    total = sum(filter_num)
    fc_bound = 1.0 / (total ** 0.5)
    w_fc = jax.random.uniform(next(keys), (total, class_size), jnp.float32,
                              -fc_bound, fc_bound)
    b_fc = jax.random.uniform(next(keys), (1, class_size), jnp.float32,
                              -fc_bound, fc_bound)
    return {"embed1": emb1, "embed2": emb2, "w_all": w_all, "conv_b": conv_b,
            "w_fc": w_fc, "b_fc": b_fc}


def cnn_forward(params, token_ids, *, filters, filter_num):
    """token_ids: (B, T) int32 -> logits (B, CLASS_SIZE)."""
    # Data-dependent embedding gather kept in plain JAX (glue).
    e1 = jnp.take(params["embed1"], token_ids, axis=0)    # (B, T, D)
    e2 = jnp.take(params["embed2"], token_ids, axis=0)    # (B, T, D)
    emb_cat = jnp.concatenate([e1, e2], axis=-1)          # (B, T, C_in*D), channel-major
    return cnn_conv_head(emb_cat, params["w_all"], params["conv_b"],
                         params["w_fc"], params["b_fc"],
                         filters=filters, filter_num=filter_num)


if __name__ == "__main__":
    # Small, forward-consistent shapes (multichannel model).
    VOCAB, D, T, CLS = 50, 32, 16, 8
    FILTERS = [3, 4, 5]
    FILTER_NUM = [32, 32, 32]
    IN_CHANNEL = 2                      # MODEL == 'multichannel'
    B = 2

    key = jax.random.PRNGKey(0)
    k_param, k_tok = jax.random.split(key)
    params = init_params(k_param, vocab_size=VOCAB, word_dim=D, class_size=CLS,
                         filters=FILTERS, filter_num=FILTER_NUM,
                         in_channel=IN_CHANNEL)
    token_ids = jax.random.randint(k_tok, (B, T), 0, VOCAB, dtype=jnp.int32)

    fwd = jax.jit(functools.partial(cnn_forward, filters=tuple(FILTERS),
                                    filter_num=tuple(FILTER_NUM)))
    out = jax.block_until_ready(fwd(params, token_ids))

    assert out.shape == (B, CLS), out.shape
    assert bool(jnp.all(jnp.isfinite(out)))
    print("KERNEL_OK")
</pallas_src>

<mosaic_0001>
module attributes {stable_mosaic.version = 11 : i64} {
  func.func @_cnn_kernel(%arg0: i32, %arg1: memref<2x16x64xf32, #tpu.memory_space<vmem>>, %arg2: memref<64x384xbf16, #tpu.memory_space<vmem>>, %arg3: memref<1x32xf32, #tpu.memory_space<vmem>>, %arg4: memref<1x32xf32, #tpu.memory_space<vmem>>, %arg5: memref<1x32xf32, #tpu.memory_space<vmem>>, %arg6: memref<96x8xf32, #tpu.memory_space<vmem>>, %arg7: memref<1x8xf32, #tpu.memory_space<vmem>>, %arg8: memref<2x8xf32, #tpu.memory_space<vmem>>) attributes {dimension_semantics = [#tpu.dimension_semantics<parallel>], iteration_bounds = array<i64: 1>, scalar_prefetch = 0 : i64, scratch_operands = 0 : i64, tpu.core_type = #tpu.core_type<tc>, window_params = [{transform_indices = @transform_0, window_bounds = array<i64: 2, 16, 64>}, {pipeline_mode = #tpu.pipeline_mode<synchronous>, transform_indices = @transform_1, window_bounds = array<i64: 64, 384>}, {pipeline_mode = #tpu.pipeline_mode<synchronous>, transform_indices = @transform_2, window_bounds = array<i64: 1, 32>}, {pipeline_mode = #tpu.pipeline_mode<synchronous>, transform_indices = @transform_3, window_bounds = array<i64: 1, 32>}, {pipeline_mode = #tpu.pipeline_mode<synchronous>, transform_indices = @transform_4, window_bounds = array<i64: 1, 32>}, {pipeline_mode = #tpu.pipeline_mode<synchronous>, transform_indices = @transform_5, window_bounds = array<i64: 96, 8>}, {pipeline_mode = #tpu.pipeline_mode<synchronous>, transform_indices = @transform_6, window_bounds = array<i64: 1, 8>}, {transform_indices = @transform_7, window_bounds = array<i64: 2, 8>}]} {
    %c0 = arith.constant 0 : index
    %c0_0 = arith.constant 0 : index
    %c0_1 = arith.constant 0 : index
    %0 = vector.load %arg1[%c0, %c0_0, %c0_1] : memref<2x16x64xf32, #tpu.memory_space<vmem>>, vector<2x16x64xf32>
    %1 = vector.shape_cast %0 : vector<2x16x64xf32> to vector<32x64xf32>
    %2 = arith.truncf %1 : vector<32x64xf32> to vector<32x64xbf16>
    %c0_2 = arith.constant 0 : index
    %c0_3 = arith.constant 0 : index
    %3 = vector.load %arg2[%c0_2, %c0_3] : memref<64x384xbf16, #tpu.memory_space<vmem>>, vector<64x384xbf16>
    %cst = arith.constant dense<0.000000e+00> : vector<32x384xf32>
    %4 = tpu.matmul %2, %3, %cst {dimension_numbers = #tpu.dot_dimension_numbers<[1], [0], [0], [1], [0, 0, 1, 1], [], []>} : vector<32x64xbf16>, vector<64x384xbf16>, vector<32x384xf32> -> vector<32x384xf32>
    %5 = vector.shape_cast %4 : vector<32x384xf32> to vector<2x16x384xf32>
    %6 = vector.extract_strided_slice %5 {offsets = [0, 0, 0], sizes = [2, 14, 32], strides = [1, 1, 1]} : vector<2x16x384xf32> to vector<2x14x32xf32>
    %7 = vector.extract_strided_slice %5 {offsets = [0, 1, 32], sizes = [2, 14, 32], strides = [1, 1, 1]} : vector<2x16x384xf32> to vector<2x14x32xf32>
    %8 = arith.addf %6, %7 : vector<2x14x32xf32>
    %9 = vector.extract_strided_slice %5 {offsets = [0, 2, 64], sizes = [2, 14, 32], strides = [1, 1, 1]} : vector<2x16x384xf32> to vector<2x14x32xf32>
    %10 = arith.addf %8, %9 : vector<2x14x32xf32>
    %c0_4 = arith.constant 0 : index
    %c0_5 = arith.constant 0 : index
    %11 = vector.load %arg3[%c0_4, %c0_5] : memref<1x32xf32, #tpu.memory_space<vmem>>, vector<1x32xf32>
    %12 = vector.shape_cast %11 : vector<1x32xf32> to vector<1x1x32xf32>
    %13 = vector.broadcast %12 : vector<1x1x32xf32> to vector<2x14x32xf32>
    %14 = arith.addf %10, %13 : vector<2x14x32xf32>
    %cst_6 = arith.constant 0.000000e+00 : f32
    %15 = vector.broadcast %cst_6 : f32 to vector<2x14x32xf32>
    %16 = arith.maximumf %14, %15 : vector<2x14x32xf32>
    %cst_7 = arith.constant dense<0xFF800000> : vector<2x32xf32>
    %17 = vector.multi_reduction <maximumf>, %16, %cst_7 [1] : vector<2x14x32xf32> to vector<2x32xf32>
    %18 = vector.extract_strided_slice %5 {offsets = [0, 0, 96], sizes = [2, 13, 32], strides = [1, 1, 1]} : vector<2x16x384xf32> to vector<2x13x32xf32>
    %19 = vector.extract_strided_slice %5 {offsets = [0, 1, 128], sizes = [2, 13, 32], strides = [1, 1, 1]} : vector<2x16x384xf32> to vector<2x13x32xf32>
    %20 = arith.addf %18, %19 : vector<2x13x32xf32>
    %21 = vector.extract_strided_slice %5 {offsets = [0, 2, 160], sizes = [2, 13, 32], strides = [1, 1, 1]} : vector<2x16x384xf32> to vector<2x13x32xf32>
    %22 = arith.addf %20, %21 : vector<2x13x32xf32>
    %23 = vector.extract_strided_slice %5 {offsets = [0, 3, 192], sizes = [2, 13, 32], strides = [1, 1, 1]} : vector<2x16x384xf32> to vector<2x13x32xf32>
    %24 = arith.addf %22, %23 : vector<2x13x32xf32>
    %c0_8 = arith.constant 0 : index
    %c0_9 = arith.constant 0 : index
    %25 = vector.load %arg4[%c0_8, %c0_9] : memref<1x32xf32, #tpu.memory_space<vmem>>, vector<1x32xf32>
    %26 = vector.shape_cast %25 : vector<1x32xf32> to vector<1x1x32xf32>
    %27 = vector.broadcast %26 : vector<1x1x32xf32> to vector<2x13x32xf32>
    %28 = arith.addf %24, %27 : vector<2x13x32xf32>
    %cst_10 = arith.constant 0.000000e+00 : f32
    %29 = vector.broadcast %cst_10 : f32 to vector<2x13x32xf32>
    %30 = arith.maximumf %28, %29 : vector<2x13x32xf32>
    %cst_11 = arith.constant dense<0xFF800000> : vector<2x32xf32>
    %31 = vector.multi_reduction <maximumf>, %30, %cst_11 [1] : vector<2x13x32xf32> to vector<2x32xf32>
    %32 = vector.extract_strided_slice %5 {offsets = [0, 0, 224], sizes = [2, 12, 32], strides = [1, 1, 1]} : vector<2x16x384xf32> to vector<2x12x32xf32>
    %33 = vector.extract_strided_slice %5 {offsets = [0, 1, 256], sizes = [2, 12, 32], strides = [1, 1, 1]} : vector<2x16x384xf32> to vector<2x12x32xf32>
    %34 = arith.addf %32, %33 : vector<2x12x32xf32>
    %35 = vector.extract_strided_slice %5 {offsets = [0, 2, 288], sizes = [2, 12, 32], strides = [1, 1, 1]} : vector<2x16x384xf32> to vector<2x12x32xf32>
    %36 = arith.addf %34, %35 : vector<2x12x32xf32>
    %37 = vector.extract_strided_slice %5 {offsets = [0, 3, 320], sizes = [2, 12, 32], strides = [1, 1, 1]} : vector<2x16x384xf32> to vector<2x12x32xf32>
    %38 = arith.addf %36, %37 : vector<2x12x32xf32>
    %39 = vector.extract_strided_slice %5 {offsets = [0, 4, 352], sizes = [2, 12, 32], strides = [1, 1, 1]} : vector<2x16x384xf32> to vector<2x12x32xf32>
    %40 = arith.addf %38, %39 : vector<2x12x32xf32>
    %c0_12 = arith.constant 0 : index
    %c0_13 = arith.constant 0 : index
    %41 = vector.load %arg5[%c0_12, %c0_13] : memref<1x32xf32, #tpu.memory_space<vmem>>, vector<1x32xf32>
    %42 = vector.shape_cast %41 : vector<1x32xf32> to vector<1x1x32xf32>
    %43 = vector.broadcast %42 : vector<1x1x32xf32> to vector<2x12x32xf32>
    %44 = arith.addf %40, %43 : vector<2x12x32xf32>
    %cst_14 = arith.constant 0.000000e+00 : f32
    %45 = vector.broadcast %cst_14 : f32 to vector<2x12x32xf32>
    %46 = arith.maximumf %44, %45 : vector<2x12x32xf32>
    %cst_15 = arith.constant dense<0xFF800000> : vector<2x32xf32>
    %47 = vector.multi_reduction <maximumf>, %46, %cst_15 [1] : vector<2x12x32xf32> to vector<2x32xf32>
    %48 = tpu.concatenate %17, %31, %47 in 1 : vector<2x32xf32>, vector<2x32xf32>, vector<2x32xf32> -> vector<2x96xf32>
    %c0_16 = arith.constant 0 : index
    %c0_17 = arith.constant 0 : index
    %49 = vector.load %arg6[%c0_16, %c0_17] : memref<96x8xf32, #tpu.memory_space<vmem>>, vector<96x8xf32>
    %cst_18 = arith.constant dense<0.000000e+00> : vector<2x8xf32>
    %50 = tpu.matmul %48, %49, %cst_18 {dimension_numbers = #tpu.dot_dimension_numbers<[1], [0], [0], [1], [0, 0, 1, 1], [], []>} : vector<2x96xf32>, vector<96x8xf32>, vector<2x8xf32> -> vector<2x8xf32>
    %c0_19 = arith.constant 0 : index
    %c0_20 = arith.constant 0 : index
    %51 = vector.load %arg7[%c0_19, %c0_20] : memref<1x8xf32, #tpu.memory_space<vmem>>, vector<1x8xf32>
    %52 = vector.broadcast %51 : vector<1x8xf32> to vector<2x8xf32>
    %53 = arith.addf %50, %52 : vector<2x8xf32>
    %c0_21 = arith.constant 0 : index
    %c0_22 = arith.constant 0 : index
    %54 = vector.load %arg8[%c0_21, %c0_22] : memref<2x8xf32, #tpu.memory_space<vmem>>, vector<2x8xf32>
    tpu.vector_store %arg8[%c0_21, %c0_22], %53 {strides = array<i32>} : memref<2x8xf32, #tpu.memory_space<vmem>>, vector<2x8xf32>,
    return
  }
  func.func @transform_0(%arg0: i32) -> (i32, i32, i32) {
    %c0_i32 = arith.constant 0 : i32
    %c0_i32_0 = arith.constant 0 : i32
    %c0_i32_1 = arith.constant 0 : i32
    return %arg0, %c0_i32, %c0_i32_0 : i32, i32, i32
  }
  func.func @transform_1(%arg0: i32) -> (i32, i32) {
    %c0_i32 = arith.constant 0 : i32
    %c0_i32_0 = arith.constant 0 : i32
    %c0_i32_1 = arith.constant 0 : i32
    return %c0_i32, %c0_i32_0 : i32, i32
  }
  func.func @transform_2(%arg0: i32) -> (i32, i32) {
    %c0_i32 = arith.constant 0 : i32
    %c0_i32_0 = arith.constant 0 : i32
    %c0_i32_1 = arith.constant 0 : i32
    return %c0_i32, %c0_i32_0 : i32, i32
  }
  func.func @transform_3(%arg0: i32) -> (i32, i32) {
    %c0_i32 = arith.constant 0 : i32
    %c0_i32_0 = arith.constant 0 : i32
    %c0_i32_1 = arith.constant 0 : i32
    return %c0_i32, %c0_i32_0 : i32, i32
  }
  func.func @transform_4(%arg0: i32) -> (i32, i32) {
    %c0_i32 = arith.constant 0 : i32
    %c0_i32_0 = arith.constant 0 : i32
    %c0_i32_1 = arith.constant 0 : i32
    return %c0_i32, %c0_i32_0 : i32, i32
  }
  func.func @transform_5(%arg0: i32) -> (i32, i32) {
    %c0_i32 = arith.constant 0 : i32
    %c0_i32_0 = arith.constant 0 : i32
    %c0_i32_1 = arith.constant 0 : i32
    return %c0_i32, %c0_i32_0 : i32, i32
  }
  func.func @transform_6(%arg0: i32) -> (i32, i32) {
    %c0_i32 = arith.constant 0 : i32
    %c0_i32_0 = arith.constant 0 : i32
    %c0_i32_1 = arith.constant 0 : i32
    return %c0_i32, %c0_i32_0 : i32, i32
  }
  func.func @transform_7(%arg0: i32) -> (i32, i32) {
    %c0_i32 = arith.constant 0 : i32
    %c0_i32_0 = arith.constant 0 : i32
    return %arg0, %c0_i32 : i32, i32
  }
}

</mosaic_0001>

<bundles_post_ra>
// kernel: cnn_forward.1
= control target key start
LH: loop header
LB: loop body
LE: loop exit
PB: predicated region body
PF: predicated region fallthrough
CT: control target
= control target key end

     0   :  { %v789_v2 = vmov 0   ;;  %s1093_s0 = inlined_call_operand.vmem [shape: f32[2,16,64], index: 0, kind: input, shape index: {}]   ;;  %s1094_s1 = inlined_call_operand.vmem [shape: bf16[64,384], index: 1, kind: input, shape index: {}]   ;;  %s1095_s2 = inlined_call_operand.vmem [shape: f32[1,32], index: 2, kind: input, shape index: {}]   ;;  %s1096_s3 = inlined_call_operand.vmem [shape: f32[1,32], index: 3, kind: input, shape index: {}]   ;;  %s1097_s4 = inlined_call_operand.vmem [shape: f32[1,32], index: 4, kind: input, shape index: {}]   ;;  %s1098_s5 = inlined_call_operand.vmem [shape: f32[96,8], index: 5, kind: input, shape index: {}]   ;;  %s1099_s6 = inlined_call_operand.vmem [shape: f32[1,8], index: 6, kind: input, shape index: {}]   ;;  %s1100_s7 = inlined_call_operand.hbm [shape: f32[2,8], index: 7, kind: output, shape index: {}]  }
   0x1   :  { %v751_v0 = vld [vmem:[%s1094_s1 + $0x4c] ss:$12 sps:$4 sm:$0xff]   ;;  %v753_v1 = vld [vmem:[%s1094_s1 + $0x48] ss:$12 sps:$4 sm:$0xff]   ;;  %153 = vmatprep.mubr.bf16.mxu1 %v789_v2  ;;  %v756_v4 = vld [vmem:[%s1094_s1 + $0x30] ss:$12 sps:$4 sm:$0xff]  }
   0x2   :  { %129 = vmatprep.subr.bf16.mxu1 %v751_v0  ;;  %v754_v3 = vld [vmem:[%s1094_s1 + $0x34] ss:$12 sps:$4 sm:$0xff]   ;;  %v757_v5 = vld [vmem:[%s1094_s1 + $0x1c] ss:$12 sps:$4 sm:$0xff]   ;;  %v759_v6 = vld [vmem:[%s1094_s1 + $0x18] ss:$12 sps:$4 sm:$0xff]  }
   0x3   :  { %130 = vmatpush1.bf16.msra.mxu1 %v753_v1  ;;  %v760_v7 = vld [vmem:[%s1094_s1 + $0x4] ss:$12 sps:$4 sm:$0xff]  }
   0x4   :  { %131 = vmatprep.subr.bf16.mxu1 %v754_v3 }
   0x7   :  { %132 = vmatpush1.bf16.msra.mxu1 %v756_v4 }
   0x8   :  { %133 = vmatprep.subr.bf16.mxu1 %v757_v5 }
   0x9   :  { %12 = vsyncpa [#allocation3], 0  ;;  %v762_v8 = vld [vmem:[%s1094_s1] ss:$12 sps:$4 sm:$0xff]   ;;  %v763_v11 = vld [vmem:[%s1094_s1 + $0x50] ss:$12 sps:$4 sm:$0xff]  }
   0xa   :  { %v28_v9 = vld [vmem:[%s1093_s0] sm:$0xff]  ;;  %v29_v10 = vld [vmem:[%s1093_s0 + $0x8] sm:$0xff]  ;;  %vm114_vm0 = vcmask 523264   ;;  %v30_v14 = vld [vmem:[%s1093_s0 + $0x10] sm:$0xff]  ;;  %vm227_vm1 = vcmask 1046528   ;;  %vm250_vm2 = vcmask 1045504  }
   0xb   :  { %134 = vmatpush1.bf16.msra.mxu1 %v759_v6  ;;  %v32_v12 = vpack.c.bf16 %v29_v10, %v28_v9  ;;  %v764_v13 = vld [vmem:[%s1094_s1 + $0x38] ss:$12 sps:$4 sm:$0xff]   ;;  %v765_v16 = vld [vmem:[%s1094_s1 + $0x20] ss:$12 sps:$4 sm:$0xff]   ;;  %v766_v18 = vld [vmem:[%s1094_s1 + $0x8] ss:$12 sps:$4 sm:$0xff]  }
   0xc   :  { %135 = vmatprep.subr.bf16.mxu1 %v760_v7  ;;  %v31_v15 = vld [vmem:[%s1093_s0 + $0x18] sm:$0xff]  ;;  %s790_s0 = smov 96   ;;  %s791_s1 = smov 64   ;;  %vm356_vm3 = vcmask 1044480   ;;  %vm486_vm4 = vcmask 1043456   ;;  %vm396_vm5 = vcmask 1048320  }
   0xd   :  { %v33_v17 = vpack.c.bf16 %v31_v15, %v30_v14  ;;  %s792_s10 = smov 32   ;;  %v683_v9 = vld [vmem:[%s1097_s4] ss:$0 sm:$0xff]  ;;  %vm519_vm6 = vcmask 1044224   ;;  %vm398_vm7 = vcmask 1045248   ;;  %vm794_vm8 = vmmov 0  }
   0xe   :  { %v682_v10 = vld [vmem:[%s1096_s3] ss:$0 sm:$0xff]  ;;  %vm539_vm9 = vcmask 1041409   ;;  %vm290_vm10 = vcmask 259072   ;;  %vm288_vm11 = vcmask 261120   ;;  %vm575_vm12 = vcmask 785408  }
   0xf   :  { %136 = vmatpush1.bf16.msra.mxu1 %v762_v8  ;;  %s795_s14 = smov [#allocation2]   ;;  %vm649_vm13 = vcmask 58368  }
  0x10   :  { %705 = vmatprep.subr.bf16.mxu1 %v763_v11  ;;  %s657_s3 = sshll.u32 %s795_s14, 4  ;;  %s658_s3 = int_to_ptr.vmem [resolvable:$true] %s657_s3 }
  0x11   :  { %s767_s4 = scalar_lea.vmem %s658_s3, 32  ;;  %p772_p1 = scmp.lt.s32.totalorder %s658_s3, %s658_s3 }
  0x12   :  { %677 = vmatmul.mubr.msk.bf16.vlgmr.msra.gmra.mxu1 %vm114_vm0, %v32_v12  ;;  %p768_p0 = scmp.ne.s32.totalorder %s658_s3, %s767_s4  ;;  %p773_p2 = scmp.lt.s32.totalorder %s767_s4, %s767_s4 }
  0x13   :  { %706 = vmatpush3.bf16.msra.mxu1 %v763_v11  ;;  %163 = vmatprep.mubr.bf16.mxu1 %v789_v2 }
  0x14   :  { %707 = vmatprep.subr.bf16.mxu1 %v764_v13  ;;  %p774_p3 = por %p773_p2, %p772_p1 }
  0x16   :  { %p775_p4 = pnand %p774_p3, %p768_p0 }
  0x17   :  { %708 = vmatpush3.bf16.msra.mxu1 %v764_v13 }
  0x18   :  { %709 = vmatprep.subr.bf16.mxu1 %v765_v16 }
  0x1a   :  { %678 = vmatmul.mubr.msk.bf16.gmra.mxu1 %vm114_vm0, %v33_v17 }
  0x1b   :  { %710 = vmatpush3.bf16.msra.mxu1 %v765_v16  ;;  %713 = vmatprep.mubr.msk.bf16.mxu1 %vm114_vm0, %v32_v12 }
  0x1c   :  { %711 = vmatprep.subr.bf16.mxu1 %v766_v18 }
  0x1f   :  { %712 = vmatpush3.bf16.msra.mxu1 %v766_v18  ;;  %v567_v18 = vld [vmem:[%s1098_s5 + $0x58] sm:$0xff] }
  0x22   :  { %714 = vmatmul.mubr.msk.bf16.vlgmr.msra.gmra.mxu1 %vm114_vm0, %v33_v17 }
  0xd2   :  { %v888_v19 = vpop.f32.mrf.mxu1 }
  0xd3   :  { %v228_v12 = vrot.slane %v888_v19, 1 }
  0xd4   :  { %v890_v20 = vpop.f32.mrf.mxu1 }
  0xd5   :  { %v312_v24 = vrot.slane %v890_v20, 1  ;;  %v334_v29 = vrot.slane %v890_v20, 2  ;;  %v357_v34 = vrot.slane %v890_v20, 3 }
  0xd6   :  { %v892_v21 = vpop.f32.mrf.mxu1 }
  0xd7   :  { %v229_v11 = vrot.slane %v892_v21, 1  ;;  %v252_v17 = vrot.slane %v892_v21, 2 }
  0xd8   :  { %v894_v22 = vpop.f32.mrf.mxu1 }
  0xd9   :  { %v313_v23 = vrot.slane %v894_v22, 1  ;;  %v335_v27 = vrot.slane %v894_v22, 2  ;;  %v358_v32 = vrot.slane %v894_v22, 3  ;;  %v230_v14 = vsel %vm227_vm1, %v228_v12, %v229_v11 }
  0xda   :  { %v898_v25 = vpop.f32.mrf.mxu1 }
  0xdb   :  { %320 = vrot.lane.b32.xlu1 %v313_v23, %s790_s0  ;;  %v314_v26 = vsel %vm227_vm1, %v312_v24, %v313_v23  ;;  %v336_v31 = vsel %vm250_vm2, %v334_v29, %v335_v27  ;;  %v359_v36 = vsel %vm356_vm3, %v357_v34, %v358_v32  ;;  %v231_v13 = vrot.slane %v898_v25, 1  ;;  %v564_v34 = vld [vmem:[%s1098_s5 + $0x40] sm:$0xff] }
  0xdc   :  { %318 = vrot.lane.b32.xlu0 %v314_v26, %s790_s0  ;;  %v904_v28 = vpop.f32.mrf.mxu1  ;;  %v251_v23 = vrot.slane %v888_v19, 2  ;;  %v793_v24 = vmov 0.0   ;;  %v566_v26 = vld [vmem:[%s1098_s5 + $0x50] sm:$0xff] }
  0xdd   :  { %v315_v39 = vrot.slane %v904_v28, 1  ;;  %v337_v47 = vrot.slane %v904_v28, 2  ;;  %v360_v53 = vrot.slane %v904_v28, 3  ;;  %717 = vmatprep.subr.mxu0 %v793_v24  ;;  %741 = vmatprep.mubr.msk.f32.mxu0 %vm794_vm8, %v793_v24 }
  0xde   :  { %v907_v30 = vpop.f32.mrf.mxu1  ;;  %718 = vmatpush3.msra.mxu0 %v567_v18  ;;  %v253_v29 = vsel %vm250_vm2, %v251_v23, %v252_v17 }
  0xdf   :  { %342 = vrot.lane.b32.xlu1 %v335_v27, %s791_s1  ;;  %v232_v15 = vrot.slane %v907_v30, 1  ;;  %v254_v27 = vrot.slane %v898_v25, 2  ;;  %719 = vmatprep.subr.mxu0 %v793_v24 }
  0xe0   :  { %340 = vrot.lane.b32.xlu0 %v336_v31, %s791_s1  ;;  %v913_v33 = vpop.f32.mrf.mxu1  ;;  %v255_v31 = vrot.slane %v907_v30, 2  ;;  %720 = vmatpush3.msra.mxu0 %v566_v26 }
  0xe1   :  { %v316_v37 = vrot.slane %v913_v33, 1  ;;  %v338_v44 = vrot.slane %v913_v33, 2  ;;  %v361_v51 = vrot.slane %v913_v33, 3  ;;  %v233_v16 = vsel %vm227_vm1, %v231_v13, %v232_v15  ;;  %721 = vmatprep.subr.mxu0 %v793_v24 }
  0xe2   :  { %v715_v35 = vpop.f32.mrf.mxu1 }
  0xe3   :  { %365 = vrot.lane.b32.xlu1 %v358_v32, %s792_s10  ;;  %v490_v40 = vrot.slane %v715_v35, 4  ;;  %v317_v42 = vsel %vm227_vm1, %v315_v39, %v316_v37  ;;  %v339_v50 = vsel %vm250_vm2, %v337_v47, %v338_v44  ;;  %v445_v54 = vrot.slane %v715_v35, 2  ;;  %v565_v32 = vld [vmem:[%s1098_s5 + $0x48] sm:$0xff]  ;;  %v560_v39 = vld [vmem:[%s1098_s5 + $0x20] sm:$0xff] }
  0xe4   :  { %363 = vrot.lane.b32.xlu0 %v359_v36, %s792_s10  ;;  %v208_v38 = vpop.f32.mrf.mxu1  ;;  %v362_v56 = vsel %vm356_vm3, %v360_v53, %v361_v51  ;;  %v467_v58 = vrot.slane %v715_v35, 3  ;;  %v423_v62 = vrot.slane %v715_v35, 1  ;;  %722 = vmatpush3.msra.mxu0 %v565_v32  ;;  %v256_v35 = vsel %vm250_vm2, %v254_v27, %v255_v31  ;;  %v563_v36 = vld [vmem:[%s1098_s5 + $0x38] sm:$0xff] }
  0xe5   :  { %v487_v43 = vrot.slane %v208_v38, 4  ;;  %v420_v0 = vrot.slane %v208_v38, 1  ;;  %v442_v2 = vrot.slane %v208_v38, 2  ;;  %v464_v5 = vrot.slane %v208_v38, 3  ;;  %723 = vmatprep.subr.mxu0 %v793_v24  ;;  %v561_v38 = vld [vmem:[%s1098_s5 + $0x28] sm:$0xff] }
  0xe6   :  { %v921_v41 = vpop.f32.mrf.mxu1  ;;  %724 = vmatpush3.msra.mxu0 %v564_v34 }
  0xe7   :  { %324 = vrot.lane.b32.xlu1 %v316_v37, %s790_s0  ;;  %v491_v45 = vrot.slane %v921_v41, 4  ;;  %v446_v55 = vrot.slane %v921_v41, 2  ;;  %v424_v57 = vrot.slane %v921_v41, 1  ;;  %v468_v59 = vrot.slane %v921_v41, 3  ;;  %725 = vmatprep.subr.mxu0 %v793_v24  ;;  %v562_v37 = vld [vmem:[%s1098_s5 + $0x30] sm:$0xff] }
  0xe8   :  { %322 = vrot.lane.b32.xlu0 %v317_v42, %s790_s0  ;;  %v928_v46 = vpop.f32.mrf.mxu1  ;;  %726 = vmatpush3.msra.mxu0 %v563_v36  ;;  %v558_v42 = vld [vmem:[%s1098_s5 + $0x10] sm:$0xff] }
  0xe9   :  { %v488_v48 = vrot.slane %v928_v46, 4  ;;  %v934_v49 = vsel %vm486_vm4, %v490_v40, %v491_v45  ;;  %v447_v60 = vsel %vm250_vm2, %v445_v54, %v446_v55  ;;  %v469_v61 = vsel %vm356_vm3, %v467_v58, %v468_v59  ;;  %727 = vmatprep.subr.mxu0 %v793_v24  ;;  %v559_v40 = vld [vmem:[%s1098_s5 + $0x18] sm:$0xff] }
  0xea   :  { %v421_v63 = vrot.slane %v928_v46, 1  ;;  %v425_v1 = vsel %vm227_vm1, %v423_v62, %v424_v57  ;;  %v443_v3 = vrot.slane %v928_v46, 2  ;;  %v465_v6 = vrot.slane %v928_v46, 3  ;;  %728 = vmatpush3.msra.mxu0 %v562_v37 }
  0xeb   :  { %346 = vrot.lane.b32.xlu1 %v338_v44, %s791_s1  ;;  %v941_v52 = vsel %vm486_vm4, %v487_v43, %v488_v48  ;;  %729 = vmatprep.subr.mxu0 %v793_v24  ;;  %v557_v43 = vld [vmem:[%s1098_s5 + $0x8] sm:$0xff] }
  0xec   :  { %344 = vrot.lane.b32.xlu0 %v339_v50, %s791_s1  ;;  %v422_v4 = vsel %vm227_vm1, %v420_v0, %v421_v63  ;;  %v444_v7 = vsel %vm250_vm2, %v442_v2, %v443_v3  ;;  %v466_v8 = vsel %vm356_vm3, %v464_v5, %v465_v6  ;;  %730 = vmatpush3.msra.mxu0 %v561_v38 }
  0xed   :  { %731 = vmatprep.subr.mxu0 %v793_v24 }
  0xee   :  { %732 = vmatpush3.msra.mxu0 %v560_v39 }
  0xef   :  { %369 = vrot.lane.b32.xlu1 %v361_v51, %s792_s10  ;;  %733 = vmatprep.subr.mxu0 %v793_v24 }
  0xf0   :  { %367 = vrot.lane.b32.xlu0 %v362_v56, %s792_s10  ;;  %734 = vmatpush3.msra.mxu0 %v559_v40 }
  0xf1   :  { %735 = vmatprep.subr.mxu0 %v793_v24 }
  0xf2   :  { %736 = vmatpush3.msra.mxu0 %v558_v42 }
  0xf3   :  { %432 = vrot.lane.b32.xlu1 %v424_v57, %s790_s0  ;;  %737 = vmatprep.subr.mxu0 %v793_v24 }
  0xf4   :  { %452 = vrot.lane.b32.xlu0 %v447_v60, %s791_s1  ;;  %738 = vmatpush3.msra.mxu0 %v557_v43 }
  0xf5   :  { %739 = vmatprep.subr.mxu0 %v793_v24 }
  0xf7   :  { %454 = vrot.lane.b32.xlu1 %v446_v55, %s791_s1 }
  0xf8   :  { %474 = vrot.lane.b32.xlu0 %v469_v61, %s792_s10 }
  0xfb   :  { %476 = vrot.lane.b32.xlu1 %v468_v59, %s792_s10 }
  0xfc   :  { %428 = vrot.lane.b32.xlu0 %v421_v63, %s790_s0 }
  0xff   :  { %430 = vrot.lane.b32.xlu1 %v425_v1, %s790_s0 }
 0x100   :  { %426 = vrot.lane.b32.xlu0 %v422_v4, %s790_s0 }
 0x103   :  { %450 = vrot.lane.b32.xlu1 %v443_v3, %s791_s1 }
 0x104   :  { %448 = vrot.lane.b32.xlu0 %v444_v7, %s791_s1 }
 0x107   :  { %472 = vrot.lane.b32.xlu1 %v465_v6, %s792_s10 }
 0x108   :  { %470 = vrot.lane.b32.xlu0 %v466_v8, %s792_s10 }
 0x10b   :  { %507 = vrot.lane.b32.xlu1 %v683_v9, %s790_s0 }
 0x10c   :  { %385 = vrot.lane.b32.xlu0 %v682_v10, %s790_s0 }
 0x10f   :  { %236 = vrot.lane.b32.xlu1 %v229_v11, %s790_s0 }
 0x110   :  { %234 = vrot.lane.b32.xlu0 %v230_v14, %s790_s0 }
 0x113   :  { %240 = vrot.lane.b32.xlu1 %v232_v15, %s790_s0 }
 0x114   :  { %238 = vrot.lane.b32.xlu0 %v233_v16, %s790_s0 }
 0x117   :  { %259 = vrot.lane.b32.xlu1 %v252_v17, %s791_s1 }
 0x118   :  { %257 = vrot.lane.b32.xlu0 %v253_v29, %s791_s1 }
 0x11b   :  { %263 = vrot.lane.b32.xlu1 %v255_v31, %s791_s1 }
 0x11c   :  { %261 = vrot.lane.b32.xlu0 %v256_v35, %s791_s1 }
 0x14d   :  { %v321_v44 = vpop.permute.xlu1 %320 }
 0x14e   :  { %v319_v47 = vpop.permute.xlu0 %318  ;;  %v331_v16 = vadd.f32 %v321_v44, %v892_v21 }
 0x14f   :  { %v330_v17 = vadd.f32 %v319_v47, %v888_v19 }
 0x151   :  { %v343_v50 = vpop.permute.xlu1 %342 }
 0x152   :  { %v341_v51 = vpop.permute.xlu0 %340 }
 0x155   :  { %v366_v53 = vpop.permute.xlu1 %365 }
 0x156   :  { %v364_v54 = vpop.permute.xlu0 %363 }
 0x159   :  { %v325_v55 = vpop.permute.xlu1 %324 }
 0x15a   :  { %v323_v56 = vpop.permute.xlu0 %322  ;;  %v333_v23 = vadd.f32 %v325_v55, %v907_v30 }
 0x15d   :  { %v347_v57 = vpop.permute.xlu1 %346 }
 0x15e   :  { %v345_v58 = vpop.permute.xlu0 %344  ;;  %v355_v32 = vadd.f32 %v347_v57, %v333_v23 }
 0x161   :  { %v370_v59 = vpop.permute.xlu1 %369 }
 0x162   :  { %v368_v60 = vpop.permute.xlu0 %367  ;;  %v378_v43 = vadd.f32 %v370_v59, %v355_v32 }
 0x165   :  { %v433_v61 = vpop.permute.xlu1 %432 }
 0x166   :  { %v453_v62 = vpop.permute.xlu0 %452  ;;  %v441_v6 = vadd.f32 %v433_v61, %v913_v33 }
 0x169   :  { %v455_v63 = vpop.permute.xlu1 %454 }
 0x16a   :  { %v475_v0 = vpop.permute.xlu0 %474  ;;  %v463_v9 = vadd.f32 %v455_v63, %v441_v6 }
 0x16d   :  { %v477_v1 = vpop.permute.xlu1 %476 }
 0x16e   :  { %v429_v2 = vpop.permute.xlu0 %428  ;;  %v485_v13 = vadd.f32 %v477_v1, %v463_v9 }
 0x16f   :  { %v439_v10 = vadd.f32 %v429_v2, %v894_v22  ;;  %v353_v22 = vadd.f32 %v343_v50, %v331_v16 }
 0x170   :  { %v500_v34 = vadd.f32 %v491_v45, %v485_v13  ;;  %v556_v13 = vld [vmem:[%s1098_s5] sm:$0xff] }
 0x171   :  { %v431_v3 = vpop.permute.xlu1 %430  ;;  %v376_v37 = vadd.f32 %v366_v53, %v353_v22  ;;  %740 = vmatpush3.msra.mxu0 %v556_v13 }
 0x172   :  { %v440_v4 = vadd.f32 %v431_v3, %v904_v28  ;;  %v427_v5 = vpop.permute.xlu0 %426  ;;  %v332_v28 = vadd.f32 %v323_v56, %v898_v25 }
 0x173   :  { %v438_v12 = vadd.f32 %v427_v5, %v890_v20  ;;  %v352_v20 = vadd.f32 %v341_v51, %v330_v17 }
 0x174   :  { %v462_v7 = vadd.f32 %v453_v62, %v440_v4  ;;  %v354_v29 = vadd.f32 %v345_v58, %v332_v28 }
 0x175   :  { %v451_v8 = vpop.permute.xlu1 %450  ;;  %v375_v38 = vadd.f32 %v364_v54, %v352_v20 }
 0x176   :  { %v449_v11 = vpop.permute.xlu0 %448  ;;  %v484_v14 = vadd.f32 %v475_v0, %v462_v7  ;;  %v461_v15 = vadd.f32 %v451_v8, %v439_v10  ;;  %v377_v39 = vadd.f32 %v368_v60, %v354_v29 }
 0x177   :  { %v460_v18 = vadd.f32 %v449_v11, %v438_v12 }
 0x178   :  { %v499_v36 = vadd.f32 %v934_v49, %v484_v14 }
 0x179   :  { %v473_v33 = vpop.permute.xlu1 %472 }
 0x17a   :  { %v483_v26 = vadd.f32 %v473_v33, %v461_v15  ;;  %v471_v27 = vpop.permute.xlu0 %470 }
 0x17b   :  { %v482_v31 = vadd.f32 %v471_v27, %v460_v18 }
 0x17c   :  { %v498_v35 = vadd.f32 %v488_v48, %v483_v26 }
 0x17d   :  { %v497_v40 = vadd.f32 %v941_v52, %v482_v31  ;;  %v508_v42 = vpop.permute.xlu1 %507 }
 0x17e   :  { %v511_v44 = vadd.f32 %v508_v42, %v498_v35  ;;  %v512_v47 = vadd.f32 %v508_v42, %v499_v36  ;;  %v513_v50 = vadd.f32 %v508_v42, %v500_v34  ;;  %v386_v51 = vpop.permute.xlu0 %385 }
 0x17f   :  { %v510_v55 = vadd.f32 %v508_v42, %v497_v40  ;;  %v388_v56 = vadd.f32 %v386_v51, %v375_v38  ;;  %v389_v41 = vadd.f32 %v386_v51, %v376_v37  ;;  %v390_v45 = vadd.f32 %v386_v51, %v377_v39 }
 0x180   :  { %v515_v57 = vmax.f32 %v511_v44, 0.0  ;;  %v516_v46 = vmax.f32 %v512_v47, 0.0  ;;  %v517_v48 = vmax.f32 %v513_v50, 0.0  ;;  %v391_v58 = vadd.f32 %v386_v51, %v378_v43 }
 0x181   :  { %v514_v49 = vmax.f32 %v510_v55, 0.0  ;;  %v392_v53 = vmax.f32 %v388_v56, 0.0  ;;  %v393_v54 = vmax.f32 %v389_v41, 0.0  ;;  %v394_v60 = vmax.f32 %v390_v45, 0.0  ;;  %v237_v39 = vpop.permute.xlu1 %236 }
 0x182   :  { %v520_v52 = vsel %vm519_vm6, %v515_v57, -inf  ;;  %v528_v59 = vsel %vm396_vm5, %v516_v46, -inf  ;;  %v529_v61 = vsel %vm519_vm6, %v517_v48, -inf  ;;  %v395_v62 = vmax.f32 %v391_v58, 0.0  ;;  %v235_v40 = vpop.permute.xlu0 %234 }
 0x183   :  { %v518_v63 = vsel %vm396_vm5, %v514_v49, -inf  ;;  %v530_v0 = vmax.f32 %v528_v59, %v529_v61  ;;  %v397_v1 = vsel %vm396_vm5, %v392_v53, -inf  ;;  %v399_v2 = vsel %vm398_vm7, %v393_v54, -inf  ;;  %v681_v49 = vld [vmem:[%s1095_s2] ss:$0 sm:$0xff] }
 0x184   :  { %v521_v3 = vmax.f32 %v518_v63, %v520_v52  ;;  %v400_v4 = vmax.f32 %v397_v1, %v399_v2  ;;  %v407_v5 = vsel %vm396_vm5, %v394_v60, -inf  ;;  %v408_v6 = vsel %vm398_vm7, %v395_v62, -inf }
 0x185   :  { %v531_v7 = vrot.slane %v530_v0, 4  ;;  %v409_v8 = vmax.f32 %v407_v5, %v408_v6  ;;  %v241_v42 = vpop.permute.xlu1 %240  ;;  %v247_v41 = vadd.f32 %v237_v39, %v892_v21  ;;  %v246_v45 = vadd.f32 %v235_v40, %v888_v19 }
 0x186   :  { %v522_v9 = vrot.slane %v521_v3, 4  ;;  %v401_v10 = vrot.slane %v400_v4, 4  ;;  %v239_v43 = vpop.permute.xlu0 %238  ;;  %v249_v55 = vadd.f32 %v241_v42, %v907_v30 }
 0x187   :  { %v410_v11 = vrot.slane %v409_v8, 4  ;;  %v532_v12 = vmax.f32 %v530_v0, %v531_v7  ;;  %v248_v56 = vadd.f32 %v239_v43, %v898_v25 }
 0x188   :  { %v523_v14 = vmax.f32 %v521_v3, %v522_v9  ;;  %v402_v15 = vmax.f32 %v400_v4, %v401_v10 }
 0x189   :  { %v533_v16 = vrot.slane %v532_v12, 2  ;;  %v411_v17 = vmax.f32 %v409_v8, %v410_v11  ;;  %v260_v44 = vpop.permute.xlu1 %259 }
 0x18a   :  { %v524_v28 = vrot.slane %v523_v14, 2  ;;  %v403_v18 = vrot.slane %v402_v15, 2  ;;  %v258_v47 = vpop.permute.xlu0 %257  ;;  %v270_v48 = vadd.f32 %v260_v44, %v247_v41 }
 0x18b   :  { %v534_v33 = vmax.f32 %v532_v12, %v533_v16  ;;  %v412_v23 = vrot.slane %v411_v17, 2  ;;  %v269_v58 = vadd.f32 %v258_v47, %v246_v45 }
 0x18c   :  { %v525_v26 = vmax.f32 %v523_v14, %v524_v28  ;;  %v404_v27 = vmax.f32 %v402_v15, %v403_v18  ;;  %v281_v60 = vadd.f32 %v681_v49, %v270_v48  ;;  %v684_v18 = vld [vmem:[%s1099_s6] ss:$0 sm:$0xff] }
 0x18d   :  { %v535_v22 = vrot.slane %v534_v33, 1  ;;  %v413_v20 = vmax.f32 %v411_v17, %v412_v23  ;;  %v264_v50 = vpop.permute.xlu1 %263  ;;  %v280_v52 = vadd.f32 %v681_v49, %v269_v58 }
 0x18e   :  { %v526_v29 = vrot.slane %v525_v26, 1  ;;  %v405_v31 = vrot.slane %v404_v27, 1  ;;  %v262_v51 = vpop.permute.xlu0 %261  ;;  %v272_v57 = vadd.f32 %v264_v50, %v249_v55  ;;  %v285_v61 = vmax.f32 %v281_v60, 0.0 }
 0x18f   :  { %v536_v32 = vmax.f32 %v534_v33, %v535_v22  ;;  %v414_v34 = vrot.slane %v413_v20, 1  ;;  %v271_v46 = vadd.f32 %v262_v51, %v248_v56  ;;  %v284_v25 = vmax.f32 %v280_v52, 0.0 }
 0x190   :  { %v527_v35 = vmax.f32 %v525_v26, %v526_v29  ;;  %v406_v36 = vmax.f32 %v404_v27, %v405_v31  ;;  %v283_v53 = vadd.f32 %v681_v49, %v272_v57  ;;  %v291_v62 = vsel %vm290_vm10, %v285_v61, -inf }
 0x191   :  { %v415_v37 = vmax.f32 %v413_v20, %v414_v34  ;;  %v282_v54 = vadd.f32 %v681_v49, %v271_v46  ;;  %v289_v63 = vsel %vm288_vm11, %v284_v25, -inf }
 0x192   :  { %v550_v24 = vsel %vm539_vm9, %v536_v32, %v527_v35  ;;  %v287_v59 = vmax.f32 %v283_v53, 0.0  ;;  %v292_v1 = vmax.f32 %v289_v63, %v291_v62 }
 0x193   :  { %551 = vrot.lane.b32.xlu1 %v550_v24, %s790_s0  ;;  %v544_v38 = vsel %vm539_vm9, %v415_v37, %v406_v36  ;;  %v286_v30 = vmax.f32 %v282_v54, 0.0 }
 0x194   :  { %545 = vrot.lane.b32.xlu0 %v544_v38, %s791_s1  ;;  %v300_v21 = vsel %vm290_vm10, %v287_v59, -inf  ;;  %v293_v3 = vrot.slane %v292_v1, 4 }
 0x195   :  { %v299_v19 = vsel %vm288_vm11, %v286_v30, -inf }
 0x196   :  { %v301_v0 = vmax.f32 %v299_v19, %v300_v21  ;;  %v294_v5 = vmax.f32 %v292_v1, %v293_v3 }
 0x198   :  { %v302_v2 = vrot.slane %v301_v0, 4  ;;  %v295_v7 = vrot.slane %v294_v5, 2 }
 0x19a   :  { %v303_v4 = vmax.f32 %v301_v0, %v302_v2  ;;  %v296_v9 = vmax.f32 %v294_v5, %v295_v7 }
 0x19c   :  { %v304_v6 = vrot.slane %v303_v4, 2  ;;  %v297_v11 = vrot.slane %v296_v9, 1 }
 0x19e   :  { %v305_v8 = vmax.f32 %v303_v4, %v304_v6  ;;  %v298_v13 = vmax.f32 %v296_v9, %v297_v11 }
 0x1a0   :  { %v306_v10 = vrot.slane %v305_v8, 1 }
 0x1a2   :  { %v307_v12 = vmax.f32 %v305_v8, %v306_v10 }
 0x1a4   :  { %v540_v15 = vsel %vm539_vm9, %v307_v12, %v298_v13 }
 0x205   :  { %v552_v14 = vpop.permute.xlu1 %551 }
 0x206   :  { %v546_v16 = vpop.permute.xlu0 %545 }
 0x207   :  { %v554_v17 = vsel %vm288_vm11, %v540_v15, %v546_v16 }
 0x208   :  { %v555_v28 = vsel %vm114_vm0, %v554_v17, %v552_v14 }
 0x209   :  { %742 = vmatmul.mubr.msk.f32.vlgmr.msra.gmra.mxu0 %vm575_vm12, %v555_v28 }
 0x2c9   :  { %v645_v33 = vpop.f32.mrf.mxu0 }
 0x2ca   :  { %v646_v23 = vadd.f32 %v684_v18, %v645_v33 }
 0x2cb   :  { %v743_v26 = vpop.f32.mrf.mxu0 }
 0x2cc   :  { %650 = vst.msk [vmem:[#allocation2] sm:$0x3] %vm649_vm13, %v646_v23 }
 0x2cd   :  { %778 = shalt.err (!%p775_p4)
}
 0x2ce   :  { %660 = dma.vmem_to_hbm [thread:$0]  %s658_s3, 32, %s1100_s7, [#allocation3]  }
 0x2cf   :  { %787 = dma.done.wait [#allocation3], 32  }
 0x2d0   :  { %788 = vsyncadd [#allocation3], 4294967264 }
 0x2d1   :  { %664 = vsyncpa [#allocation3], 1 }

</bundles_post_ra>
